<compile_context>
chip_gen: v7x
topology: tpu7x:2x2x1
jax: 0.10.0
libtpu: 0.0.40
codegen_flags: <defaults>
</compile_context>

<pallas_src>
import functools

import jax
import jax.numpy as jnp
from jax import lax
from jax.experimental import pallas as pl
from jax.experimental.pallas import tpu as pltpu


_EPS = 1e-5          # PyTorch BatchNorm1d default eps
_K = 28 * 28         # 784 input features (kept unpadded; full-dim block)
_H = 256             # hidden width
_NOUT = 10           # logits
_NP = 128            # fc2 output padded to one full lane width (dense vst)


def _round_up(x, m):
    return (x + m - 1) // m * m


def _mlp_kernel(x_ref, w1_ref, b1_ref, w2_ref, b2_ref, o_ref):
    # Raw f32 x tile -> compute dtype on the VPU (free: kernel is HBM-bound).
    x = x_ref[...].astype(w1_ref.dtype)
    # fc1: (TB, 784) @ (784, 256), f32 accumulation on the MXU.
    h = jnp.dot(x, w1_ref[...], preferred_element_type=jnp.float32)
    # bias + ReLU epilogue.
    h = jnp.maximum(h + b1_ref[...], 0.0)
    # BatchNorm1d (eval) is folded into w2/b2; Dropout(0.2) is identity in eval.
    # fc2: (TB, 256) @ (256, 128-padded).
    o = jnp.dot(h.astype(w2_ref.dtype), w2_ref[...],
                preferred_element_type=jnp.float32)
    o_ref[...] = (o + b2_ref[...]).astype(o_ref.dtype)


def prepare_params(params, compute_dtype=jnp.bfloat16):
    """One-time weight prep, hoisted out of the per-call path.

    Folds eval-mode BatchNorm1d (which follows the ReLU) into fc2:
      w2' = diag(gamma * rsqrt(var + eps)) @ w2
      b2' = b2 + (beta - mean * gamma * rsqrt(var + eps)) @ w2
    then pads fc2's N from 10 -> 128 lanes and casts weights to compute_dtype
    (biases stay f32 for the f32 epilogues).
    """
    w1, b1, gamma, beta, mean, var, w2, b2 = params
    a = gamma * lax.rsqrt(var + _EPS)            # (1, 256) scale
    c = beta - mean * a                          # (1, 256) shift
    w2_f = w2 * a.reshape(_H, 1)                 # (256, 10)
    b2_f = b2 + c @ w2                           # (1, 10)

    w1c = w1.astype(compute_dtype)                                         # (784, 256)
    b1c = b1.astype(jnp.float32)                                           # (1, 256)
    w2p = jnp.pad(w2_f, ((0, 0), (0, _NP - _NOUT))).astype(compute_dtype)  # (256, 128)
    b2p = jnp.pad(b2_f, ((0, 0), (0, _NP - _NOUT))).astype(jnp.float32)    # (1, 128)
    return (w1c, b1c, w2p, b2p)


@functools.partial(jax.jit, static_argnames=("block_b",))
def net_forward(x_nchw, prepared, *, block_b=1024):
    """x_nchw: (B, 1, 28, 28) float32 -> logits (B, 10) float32."""
    w1c, b1c, w2p, b2p = prepared
    compute_dtype = w1c.dtype
    B = x_nchw.shape[0]

    # ---- batch tiling (all Python-static under jit) ----
    Bp = _round_up(max(B, 1), 8)                 # sublane multiple; usually == B
    TB = min(block_b, Bp)
    # v7x has 2 TensorCores: guarantee >= 2 "parallel" grid steps once the
    # batch is large enough to amortize per-step overhead (harmless on v5e/v6e).
    if Bp // TB < 2 and Bp >= 256:
        TB = _round_up(pl.cdiv(Bp, 2), 8)
    grid = (pl.cdiv(Bp, TB),)                    # partial last tile allowed

    # x stays f32 and unpadded along K; tiny row-pad only if B % 8 != 0.
    x2d = x_nchw.reshape(B, _K)
    if Bp != B:
        x2d = jnp.pad(x2d, ((0, Bp - B), (0, 0)))

    out_dtype = compute_dtype                    # bf16 path -> bf16 store (half the writeback bytes)
    w_itemsize = jnp.dtype(compute_dtype).itemsize
    cost = pl.CostEstimate(
        flops=2 * Bp * (_K * _H + _H * _NP),
        transcendentals=0,
        bytes_accessed=(Bp * _K * 4                       # x stream (f32)
                        + _K * _H * w_itemsize            # w1
                        + _H * _NP * w_itemsize           # w2 (BN folded)
                        + (_H + _NP) * 4                  # biases (f32)
                        + Bp * _NP * jnp.dtype(out_dtype).itemsize),
    )

    out = pl.pallas_call(
        _mlp_kernel,
        out_shape=jax.ShapeDtypeStruct((Bp, _NP), out_dtype),
        grid=grid,
        in_specs=[
            pl.BlockSpec((TB, _K), lambda i: (i, 0)),    # x tile (streamed, raw f32)
            pl.BlockSpec((_K, _H), lambda i: (0, 0)),    # w1 (VMEM-resident)
            pl.BlockSpec((1, _H), lambda i: (0, 0)),     # b1
            pl.BlockSpec((_H, _NP), lambda i: (0, 0)),   # w2 (BN folded)
            pl.BlockSpec((1, _NP), lambda i: (0, 0)),    # b2 (BN folded)
        ],
        out_specs=pl.BlockSpec((TB, _NP), lambda i: (i, 0)),
        compiler_params=pltpu.CompilerParams(
            dimension_semantics=("parallel",)),
        cost_estimate=cost,
    )(x2d, w1c, b1c, w2p, b2p)

    return out[:B, :_NOUT].astype(jnp.float32)


def init_params(key):
    """Deterministic init mirroring nn.Linear's U(-1/sqrt(fan_in), +...) and
    BatchNorm1d defaults (gamma=1, beta=0, running_mean=0, running_var=1)."""
    k1, k2, k3, k4 = jax.random.split(key, 4)
    in1, h, out = _K, _H, _NOUT

    bound1 = 1.0 / jnp.sqrt(in1)
    w1 = jax.random.uniform(k1, (in1, h), jnp.float32, -bound1, bound1)
    b1 = jax.random.uniform(k2, (1, h), jnp.float32, -bound1, bound1)

    gamma = jnp.ones((1, h), jnp.float32)
    beta = jnp.zeros((1, h), jnp.float32)
    mean = jnp.zeros((1, h), jnp.float32)
    var = jnp.ones((1, h), jnp.float32)

    bound2 = 1.0 / jnp.sqrt(h)
    w2 = jax.random.uniform(k3, (h, out), jnp.float32, -bound2, bound2)
    b2 = jax.random.uniform(k4, (1, out), jnp.float32, -bound2, bound2)

    return (w1, b1, gamma, beta, mean, var, w2, b2)


if __name__ == "__main__":
    key = jax.random.PRNGKey(0)
    kx, kp = jax.random.split(key)

    # Small MNIST-like batch, NCHW like PyTorch.
    x = jax.random.normal(kx, (2, 1, 28, 28), jnp.float32)
    params = init_params(kp)

    # Pure-JAX f32 reference (eval-mode semantics, explicit BN).
    w1, b1, gamma, beta, mean, var, w2, b2 = params
    xr = x.reshape(x.shape[0], -1)
    hr = jnp.maximum(xr @ w1 + b1, 0.0)
    hr = (hr - mean) * lax.rsqrt(var + _EPS) * gamma + beta
    ref = hr @ w2 + b2

    # f32 compute path: tight numerical check (BN fold is exact in math).
    out_f32 = net_forward(x, prepare_params(params, compute_dtype=jnp.float32))
    jax.block_until_ready(out_f32)
    assert out_f32.shape == (2, 10)
    assert jnp.allclose(out_f32, ref, atol=1e-4, rtol=1e-4)

    # bf16 compute path (default; recommended on v5e/v6e/v7x): loose check.
    out_bf16 = net_forward(x, prepare_params(params))
    jax.block_until_ready(out_bf16)
    assert out_bf16.shape == (2, 10)
    assert jnp.allclose(out_bf16, ref, atol=5e-2, rtol=5e-2)

    print("KERNEL_OK")
</pallas_src>

<mosaic_0001>
module attributes {stable_mosaic.version = 11 : i64} {
  func.func @_mlp_kernel(%arg0: i32, %arg1: memref<8x784xf32, #tpu.memory_space<vmem>>, %arg2: memref<784x256xf32, #tpu.memory_space<vmem>>, %arg3: memref<1x256xf32, #tpu.memory_space<vmem>>, %arg4: memref<256x128xf32, #tpu.memory_space<vmem>>, %arg5: memref<1x128xf32, #tpu.memory_space<vmem>>, %arg6: memref<8x128xf32, #tpu.memory_space<vmem>>) attributes {dimension_semantics = [#tpu.dimension_semantics<parallel>], iteration_bounds = array<i64: 1>, scalar_prefetch = 0 : i64, scratch_operands = 0 : i64, tpu.core_type = #tpu.core_type<tc>, window_params = [{transform_indices = @transform_0, window_bounds = array<i64: 8, 784>}, {pipeline_mode = #tpu.pipeline_mode<synchronous>, transform_indices = @transform_1, window_bounds = array<i64: 784, 256>}, {pipeline_mode = #tpu.pipeline_mode<synchronous>, transform_indices = @transform_2, window_bounds = array<i64: 1, 256>}, {pipeline_mode = #tpu.pipeline_mode<synchronous>, transform_indices = @transform_3, window_bounds = array<i64: 256, 128>}, {pipeline_mode = #tpu.pipeline_mode<synchronous>, transform_indices = @transform_4, window_bounds = array<i64: 1, 128>}, {transform_indices = @transform_5, window_bounds = array<i64: 8, 128>}]} {
    %c0 = arith.constant 0 : index
    %c0_0 = arith.constant 0 : index
    %0 = vector.load %arg1[%c0, %c0_0] : memref<8x784xf32, #tpu.memory_space<vmem>>, vector<8x784xf32>
    %c0_1 = arith.constant 0 : index
    %c0_2 = arith.constant 0 : index
    %1 = vector.load %arg2[%c0_1, %c0_2] : memref<784x256xf32, #tpu.memory_space<vmem>>, vector<784x256xf32>
    %cst = arith.constant dense<0.000000e+00> : vector<8x256xf32>
    %2 = tpu.matmul %0, %1, %cst {dimension_numbers = #tpu.dot_dimension_numbers<[1], [0], [0], [1], [0, 0, 1, 1], [], []>} : vector<8x784xf32>, vector<784x256xf32>, vector<8x256xf32> -> vector<8x256xf32>
    %c0_3 = arith.constant 0 : index
    %c0_4 = arith.constant 0 : index
    %3 = vector.load %arg3[%c0_3, %c0_4] : memref<1x256xf32, #tpu.memory_space<vmem>>, vector<1x256xf32>
    %4 = vector.broadcast %3 : vector<1x256xf32> to vector<8x256xf32>
    %5 = arith.addf %2, %4 : vector<8x256xf32>
    %cst_5 = arith.constant 0.000000e+00 : f32
    %6 = vector.broadcast %cst_5 : f32 to vector<8x256xf32>
    %7 = arith.maximumf %5, %6 : vector<8x256xf32>
    %c0_6 = arith.constant 0 : index
    %c0_7 = arith.constant 0 : index
    %8 = vector.load %arg4[%c0_6, %c0_7] : memref<256x128xf32, #tpu.memory_space<vmem>>, vector<256x128xf32>
    %cst_8 = arith.constant dense<0.000000e+00> : vector<8x128xf32>
    %9 = tpu.matmul %7, %8, %cst_8 {dimension_numbers = #tpu.dot_dimension_numbers<[1], [0], [0], [1], [0, 0, 1, 1], [], []>} : vector<8x256xf32>, vector<256x128xf32>, vector<8x128xf32> -> vector<8x128xf32>
    %c0_9 = arith.constant 0 : index
    %c0_10 = arith.constant 0 : index
    %10 = vector.load %arg5[%c0_9, %c0_10] : memref<1x128xf32, #tpu.memory_space<vmem>>, vector<1x128xf32>
    %11 = vector.broadcast %10 : vector<1x128xf32> to vector<8x128xf32>
    %12 = arith.addf %9, %11 : vector<8x128xf32>
    %c0_11 = arith.constant 0 : index
    %c0_12 = arith.constant 0 : index
    %13 = vector.load %arg6[%c0_11, %c0_12] : memref<8x128xf32, #tpu.memory_space<vmem>>, vector<8x128xf32>
    tpu.vector_store %arg6[%c0_11, %c0_12], %12 {strides = array<i32>} : memref<8x128xf32, #tpu.memory_space<vmem>>, vector<8x128xf32>,
    return
  }
  func.func @transform_0(%arg0: i32) -> (i32, i32) {
    %c0_i32 = arith.constant 0 : i32
    %c0_i32_0 = arith.constant 0 : i32
    return %arg0, %c0_i32 : i32, i32
  }
  func.func @transform_1(%arg0: i32) -> (i32, i32) {
    %c0_i32 = arith.constant 0 : i32
    %c0_i32_0 = arith.constant 0 : i32
    %c0_i32_1 = arith.constant 0 : i32
    return %c0_i32, %c0_i32_0 : i32, i32
  }
  func.func @transform_2(%arg0: i32) -> (i32, i32) {
    %c0_i32 = arith.constant 0 : i32
    %c0_i32_0 = arith.constant 0 : i32
    %c0_i32_1 = arith.constant 0 : i32
    return %c0_i32, %c0_i32_0 : i32, i32
  }
  func.func @transform_3(%arg0: i32) -> (i32, i32) {
    %c0_i32 = arith.constant 0 : i32
    %c0_i32_0 = arith.constant 0 : i32
    %c0_i32_1 = arith.constant 0 : i32
    return %c0_i32, %c0_i32_0 : i32, i32
  }
  func.func @transform_4(%arg0: i32) -> (i32, i32) {
    %c0_i32 = arith.constant 0 : i32
    %c0_i32_0 = arith.constant 0 : i32
    %c0_i32_1 = arith.constant 0 : i32
    return %c0_i32, %c0_i32_0 : i32, i32
  }
  func.func @transform_5(%arg0: i32) -> (i32, i32) {
    %c0_i32 = arith.constant 0 : i32
    %c0_i32_0 = arith.constant 0 : i32
    return %arg0, %c0_i32 : i32, i32
  }
}

</mosaic_0001>

<bundles_post_ra>
// kernel: net_forward.1
= control target key start
LH: loop header
LB: loop body
LE: loop exit
PB: predicated region body
PF: predicated region fallthrough
CT: control target
= control target key end

     0   :  { %10 = vsyncpa [#allocation3], 0  ;;  %s955_s18 = smov [#allocation2]   ;;  %s1127_s0 = inlined_call_operand.vmem [shape: f32[8,784], index: 0, kind: input, shape index: {}]   ;;  %s1128_s1 = inlined_call_operand.hbm [shape: f32[784,256], index: 1, kind: input, shape index: {}]   ;;  %s1129_s2 = inlined_call_operand.vmem [shape: f32[1,256], index: 2, kind: input, shape index: {}]   ;;  %s1130_s3 = inlined_call_operand.vmem [shape: f32[256,128], index: 3, kind: input, shape index: {}]   ;;  %s1131_s4 = inlined_call_operand.vmem [shape: f32[1,128], index: 4, kind: input, shape index: {}]   ;;  %s1132_s5 = inlined_call_operand.vmem [shape: f32[8,128], index: 5, kind: output, shape index: {}]  }
   0x1   :  { %s18_s19 = sshll.u32 %s955_s18, 4  ;;  %s931_s22 = scalar_lea.hbm %s1128_s1, 25088  ;;  %s19_s19 = int_to_ptr.vmem [resolvable:$true] %s18_s19 }
   0x2   :  { %p932_p0 = scmp.ne.s32.totalorder %s1128_s1, %s931_s22  ;;  %p935_p1 = scmp.lt.u32.totalorder %s931_s22, %s1128_s1 }
   0x4   :  { %p937_p2 = pnand %p935_p1, %p932_p0 }
   0x6   :  { %940 = shalt.err (!%p937_p2)
}
   0x7   :  { %s941_s27 = scalar_lea.vmem %s19_s19, 25088  ;;  %p946_p4 = scmp.lt.s32.totalorder %s19_s19, %s19_s19 }
   0x8   :  { %p942_p3 = scmp.ne.s32.totalorder %s19_s19, %s941_s27  ;;  %p947_p5 = scmp.lt.s32.totalorder %s941_s27, %s941_s27 }
   0xa   :  { %p948_p6 = por %p947_p5, %p946_p4 }
   0xc   :  { %p949_p7 = pnand %p948_p6, %p942_p3 }
   0xe   :  { %952 = shalt.err (!%p949_p7)
}
   0xf   :  { %s956_s28 = smov 256   ;;  %s957_s29 = smov 16  }
  0x10   :  { %24 = dma.hbm_to_vmem [thread:$0]  %s1128_s1, 25088, %s19_s19, [#allocation3], %s956_s28, %s956_s28, %s957_s29  }
  0x11   :  { %953 = dma.done.wait [#allocation3], 25088  }
  0x12   :  { %954 = vsyncadd [#allocation3], 4294942208  ;;  %v106_v0 = vld [vmem:[#allocation2 + $0x208] sm:$0xff]  ;;  %v108_v1 = vld [vmem:[#allocation2 + $0x218] sm:$0xff]  ;;  %vm249_vm0 = vcmask 130048  }
  0x13   :  { %v105_v2 = vld [vmem:[#allocation2 + $0x200] sm:$0xff]  ;;  %v755_v3 = vpack.c.bf16 %v108_v1, %v106_v0  ;;  %v107_v4 = vld [vmem:[#allocation2 + $0x210] sm:$0xff]  ;;  %v110_v5 = vld [vmem:[#allocation2 + $0x228] sm:$0xff] }
  0x14   :  { %v112_v6 = vld [vmem:[#allocation2 + $0x238] sm:$0xff]  ;;  %v757_v7 = vpack.c.bf16 %v107_v4, %v105_v2  ;;  %v109_v9 = vld [vmem:[#allocation2 + $0x220] sm:$0xff]  ;;  %v111_v10 = vld [vmem:[#allocation2 + $0x230] sm:$0xff] }
  0x15   :  { %v759_v8 = vpack.c.bf16 %v112_v6, %v110_v5  ;;  %v114_v11 = vld [vmem:[#allocation2 + $0x248] sm:$0xff]  ;;  %756 = vmatprep.subr.bf16.mxu0 %v755_v3  ;;  %v116_v12 = vld [vmem:[#allocation2 + $0x258] sm:$0xff]  ;;  %v761_v13 = vpack.c.bf16 %v111_v10, %v109_v9  ;;  %v113_v15 = vld [vmem:[#allocation2 + $0x240] sm:$0xff] }
  0x16   :  { %758 = vmatpush1.bf16.msra.mxu0 %v757_v7  ;;  %v763_v14 = vpack.c.bf16 %v116_v12, %v114_v11  ;;  %v115_v16 = vld [vmem:[#allocation2 + $0x250] sm:$0xff]  ;;  %v118_v17 = vld [vmem:[#allocation2 + $0x268] sm:$0xff]  ;;  %v120_v18 = vld [vmem:[#allocation2 + $0x278] sm:$0xff] }
  0x17   :  { %760 = vmatprep.subr.bf16.mxu0 %v759_v8  ;;  %v765_v19 = vpack.c.bf16 %v115_v16, %v113_v15  ;;  %v767_v20 = vpack.c.bf16 %v120_v18, %v118_v17  ;;  %v117_v21 = vld [vmem:[#allocation2 + $0x260] sm:$0xff]  ;;  %v119_v22 = vld [vmem:[#allocation2 + $0x270] sm:$0xff]  ;;  %v122_v23 = vld [vmem:[#allocation2 + $0x288] sm:$0xff] }
  0x18   :  { %v124_v24 = vld [vmem:[#allocation2 + $0x298] sm:$0xff]  ;;  %v769_v25 = vpack.c.bf16 %v119_v22, %v117_v21  ;;  %v121_v27 = vld [vmem:[#allocation2 + $0x280] sm:$0xff]  ;;  %v123_v28 = vld [vmem:[#allocation2 + $0x290] sm:$0xff] }
  0x19   :  { %v771_v26 = vpack.c.bf16 %v124_v24, %v122_v23  ;;  %v126_v29 = vld [vmem:[#allocation2 + $0x2a8] sm:$0xff]  ;;  %v128_v30 = vld [vmem:[#allocation2 + $0x2b8] sm:$0xff]  ;;  %v773_v31 = vpack.c.bf16 %v123_v28, %v121_v27  ;;  %v125_v33 = vld [vmem:[#allocation2 + $0x2a0] sm:$0xff] }
  0x1a   :  { %762 = vmatpush1.bf16.msra.mxu0 %v761_v13  ;;  %v775_v32 = vpack.c.bf16 %v128_v30, %v126_v29  ;;  %v127_v34 = vld [vmem:[#allocation2 + $0x2b0] sm:$0xff]  ;;  %v130_v35 = vld [vmem:[#allocation2 + $0x2c8] sm:$0xff]  ;;  %v132_v36 = vld [vmem:[#allocation2 + $0x2d8] sm:$0xff] }
  0x1b   :  { %764 = vmatprep.subr.bf16.mxu0 %v763_v14  ;;  %v777_v37 = vpack.c.bf16 %v127_v34, %v125_v33  ;;  %v129_v38 = vld [vmem:[#allocation2 + $0x2c0] sm:$0xff]  ;;  %v131_v39 = vld [vmem:[#allocation2 + $0x2d0] sm:$0xff]  ;;  %v42_v40 = vld [vmem:[#allocation2 + $0x8] sm:$0xff]  ;;  %v779_v41 = vpack.c.bf16 %v132_v36, %v130_v35 }
  0x1c   :  { %v134_v42 = vld [vmem:[#allocation2 + $0x2e8] sm:$0xff]  ;;  %v136_v43 = vld [vmem:[#allocation2 + $0x2f8] sm:$0xff]  ;;  %v41_v46 = vld [vmem:[#allocation2] sm:$0xff]  ;;  %v781_v51 = vpack.c.bf16 %v131_v39, %v129_v38 }
  0x1d   :  { %v44_v44 = vld [vmem:[#allocation2 + $0x18] sm:$0xff]  ;;  %v43_v47 = vld [vmem:[#allocation2 + $0x10] sm:$0xff]  ;;  %v46_v50 = vld [vmem:[#allocation2 + $0x28] sm:$0xff]  ;;  %v783_v54 = vpack.c.bf16 %v136_v43, %v134_v42 }
  0x1e   :  { %766 = vmatpush1.bf16.msra.mxu0 %v765_v19  ;;  %v691_v45 = vpack.c.bf16 %v44_v44, %v42_v40  ;;  %v37_v48 = vld [vmem:[%s1127_s0 + $0x18] sm:$0xff]  ;;  %v693_v49 = vpack.c.bf16 %v43_v47, %v41_v46  ;;  %v133_v52 = vld [vmem:[#allocation2 + $0x2e0] sm:$0xff]  ;;  %v135_v55 = vld [vmem:[#allocation2 + $0x2f0] sm:$0xff] }
  0x1f   :  { %768 = vmatprep.subr.bf16.mxu0 %v767_v20  ;;  %388 = vmatprep.mubr.f32.mxu0 %v37_v48  ;;  %v48_v53 = vld [vmem:[#allocation2 + $0x38] sm:$0xff]  ;;  %v45_v57 = vld [vmem:[#allocation2 + $0x20] sm:$0xff]  ;;  %v47_v58 = vld [vmem:[#allocation2 + $0x30] sm:$0xff]  ;;  %v785_v0 = vpack.c.bf16 %v135_v55, %v133_v52 }
  0x20   :  { %692 = vmatprep.subr.bf16.mxu1 %v691_v45  ;;  %v695_v56 = vpack.c.bf16 %v48_v53, %v46_v50  ;;  %v138_v59 = vld [vmem:[#allocation2 + $0x308] sm:$0xff]  ;;  %v140_v60 = vld [vmem:[#allocation2 + $0x318] sm:$0xff]  ;;  %v697_v61 = vpack.c.bf16 %v47_v58, %v45_v57  ;;  %v137_v1 = vld [vmem:[#allocation2 + $0x300] sm:$0xff] }
  0x21   :  { %694 = vmatpush1.bf16.msra.mxu1 %v693_v49  ;;  %v50_v62 = vld [vmem:[#allocation2 + $0x48] sm:$0xff]  ;;  %v52_v63 = vld [vmem:[#allocation2 + $0x58] sm:$0xff]  ;;  %v49_v3 = vld [vmem:[#allocation2 + $0x40] sm:$0xff]  ;;  %v787_v5 = vpack.c.bf16 %v140_v60, %v138_v59 }
  0x22   :  { %770 = vmatpush1.bf16.msra.mxu0 %v769_v25  ;;  %696 = vmatprep.subr.bf16.mxu1 %v695_v56  ;;  %v699_v2 = vpack.c.bf16 %v52_v63, %v50_v62  ;;  %v51_v4 = vld [vmem:[#allocation2 + $0x50] sm:$0xff]  ;;  %v54_v8 = vld [vmem:[#allocation2 + $0x68] sm:$0xff]  ;;  %v56_v9 = vld [vmem:[#allocation2 + $0x78] sm:$0xff] }
  0x23   :  { %772 = vmatprep.subr.bf16.mxu0 %v771_v26  ;;  %v139_v6 = vld [vmem:[#allocation2 + $0x310] sm:$0xff]  ;;  %v701_v7 = vpack.c.bf16 %v51_v4, %v49_v3  ;;  %v142_v10 = vld [vmem:[#allocation2 + $0x328] sm:$0xff]  ;;  %v144_v11 = vld [vmem:[#allocation2 + $0x338] sm:$0xff]  ;;  %v703_v12 = vpack.c.bf16 %v56_v9, %v54_v8 }
  0x24   :  { %v53_v13 = vld [vmem:[#allocation2 + $0x60] sm:$0xff]  ;;  %v55_v14 = vld [vmem:[#allocation2 + $0x70] sm:$0xff]  ;;  %v789_v15 = vpack.c.bf16 %v139_v6, %v137_v1  ;;  %v58_v16 = vld [vmem:[#allocation2 + $0x88] sm:$0xff]  ;;  %v791_v18 = vpack.c.bf16 %v144_v11, %v142_v10 }
  0x25   :  { %698 = vmatpush1.bf16.msra.mxu1 %v697_v61  ;;  %v60_v17 = vld [vmem:[#allocation2 + $0x98] sm:$0xff]  ;;  %v141_v19 = vld [vmem:[#allocation2 + $0x320] sm:$0xff]  ;;  %v143_v20 = vld [vmem:[#allocation2 + $0x330] sm:$0xff]  ;;  %v705_v22 = vpack.c.bf16 %v55_v14, %v53_v13 }
  0x26   :  { %774 = vmatpush1.bf16.msra.mxu0 %v773_v31  ;;  %700 = vmatprep.subr.bf16.mxu1 %v699_v2  ;;  %v146_v21 = vld [vmem:[#allocation2 + $0x348] sm:$0xff]  ;;  %v148_v23 = vld [vmem:[#allocation2 + $0x358] sm:$0xff]  ;;  %v707_v24 = vpack.c.bf16 %v60_v17, %v58_v16  ;;  %v57_v25 = vld [vmem:[#allocation2 + $0x80] sm:$0xff]  ;;  %v793_v29 = vpack.c.bf16 %v143_v20, %v141_v19 }
  0x27   :  { %776 = vmatprep.subr.bf16.mxu0 %v775_v32  ;;  %v59_v26 = vld [vmem:[#allocation2 + $0x90] sm:$0xff]  ;;  %v62_v27 = vld [vmem:[#allocation2 + $0xa8] sm:$0xff]  ;;  %v64_v28 = vld [vmem:[#allocation2 + $0xb8] sm:$0xff]  ;;  %v795_v30 = vpack.c.bf16 %v148_v23, %v146_v21 }
  0x28   :  { %v145_v31 = vld [vmem:[#allocation2 + $0x340] sm:$0xff]  ;;  %v147_v32 = vld [vmem:[#allocation2 + $0x350] sm:$0xff]  ;;  %v150_v33 = vld [vmem:[#allocation2 + $0x368] sm:$0xff]  ;;  %v709_v34 = vpack.c.bf16 %v59_v26, %v57_v25  ;;  %v711_v36 = vpack.c.bf16 %v64_v28, %v62_v27 }
  0x29   :  { %702 = vmatpush1.bf16.msra.mxu1 %v701_v7  ;;  %v152_v35 = vld [vmem:[#allocation2 + $0x378] sm:$0xff]  ;;  %v63_v38 = vld [vmem:[#allocation2 + $0xb0] sm:$0xff]  ;;  %v66_v39 = vld [vmem:[#allocation2 + $0xc8] sm:$0xff] }
  0x2a   :  { %778 = vmatpush1.bf16.msra.mxu0 %v777_v37  ;;  %704 = vmatprep.subr.bf16.mxu1 %v703_v12  ;;  %v61_v37 = vld [vmem:[#allocation2 + $0xa0] sm:$0xff]  ;;  %v68_v40 = vld [vmem:[#allocation2 + $0xd8] sm:$0xff]  ;;  %v799_v42 = vpack.c.bf16 %v152_v35, %v150_v33  ;;  %v151_v44 = vld [vmem:[#allocation2 + $0x370] sm:$0xff] }
  0x2b   :  { %780 = vmatprep.subr.bf16.mxu0 %v779_v41  ;;  %v797_v41 = vpack.c.bf16 %v147_v32, %v145_v31  ;;  %v149_v43 = vld [vmem:[#allocation2 + $0x360] sm:$0xff]  ;;  %v154_v45 = vld [vmem:[#allocation2 + $0x388] sm:$0xff]  ;;  %v713_v46 = vpack.c.bf16 %v63_v38, %v61_v37  ;;  %v156_v47 = vld [vmem:[#allocation2 + $0x398] sm:$0xff]  ;;  %v715_v48 = vpack.c.bf16 %v68_v40, %v66_v39 }
  0x2c   :  { %v65_v49 = vld [vmem:[#allocation2 + $0xc0] sm:$0xff]  ;;  %v67_v50 = vld [vmem:[#allocation2 + $0xd0] sm:$0xff]  ;;  %v72_v52 = vld [vmem:[#allocation2 + $0xf8] sm:$0xff]  ;;  %v801_v53 = vpack.c.bf16 %v151_v44, %v149_v43 }
  0x2d   :  { %706 = vmatpush1.bf16.msra.mxu1 %v705_v22  ;;  %v153_v55 = vld [vmem:[#allocation2 + $0x380] sm:$0xff]  ;;  %v155_v56 = vld [vmem:[#allocation2 + $0x390] sm:$0xff]  ;;  %v158_v57 = vld [vmem:[#allocation2 + $0x3a8] sm:$0xff]  ;;  %v717_v58 = vpack.c.bf16 %v67_v50, %v65_v49 }
  0x2e   :  { %782 = vmatpush1.bf16.msra.mxu0 %v781_v51  ;;  %708 = vmatprep.subr.bf16.mxu1 %v707_v24  ;;  %v70_v51 = vld [vmem:[#allocation2 + $0xe8] sm:$0xff]  ;;  %v160_v59 = vld [vmem:[#allocation2 + $0x3b8] sm:$0xff]  ;;  %v69_v61 = vld [vmem:[#allocation2 + $0xe0] sm:$0xff]  ;;  %v805_v1 = vpack.c.bf16 %v155_v56, %v153_v55 }
  0x2f   :  { %784 = vmatprep.subr.bf16.mxu0 %v783_v54  ;;  %v803_v54 = vpack.c.bf16 %v156_v47, %v154_v45  ;;  %v719_v60 = vpack.c.bf16 %v72_v52, %v70_v51  ;;  %v71_v62 = vld [vmem:[#allocation2 + $0xf0] sm:$0xff]  ;;  %v74_v63 = vld [vmem:[#allocation2 + $0x108] sm:$0xff]  ;;  %v807_v2 = vpack.c.bf16 %v160_v59, %v158_v57  ;;  %v157_v3 = vld [vmem:[#allocation2 + $0x3a0] sm:$0xff] }
  0x30   :  { %v159_v4 = vld [vmem:[#allocation2 + $0x3b0] sm:$0xff]  ;;  %v721_v6 = vpack.c.bf16 %v71_v62, %v69_v61  ;;  %v164_v7 = vld [vmem:[#allocation2 + $0x3d8] sm:$0xff]  ;;  %v73_v9 = vld [vmem:[#allocation2 + $0x100] sm:$0xff] }
  0x31   :  { %710 = vmatpush1.bf16.msra.mxu1 %v709_v34  ;;  %v75_v10 = vld [vmem:[#allocation2 + $0x110] sm:$0xff]  ;;  %v78_v11 = vld [vmem:[#allocation2 + $0x128] sm:$0xff]  ;;  %v80_v12 = vld [vmem:[#allocation2 + $0x138] sm:$0xff]  ;;  %v809_v13 = vpack.c.bf16 %v159_v4, %v157_v3 }
  0x32   :  { %786 = vmatpush1.bf16.msra.mxu0 %v785_v0  ;;  %712 = vmatprep.subr.bf16.mxu1 %v711_v36  ;;  %v76_v0 = vld [vmem:[#allocation2 + $0x118] sm:$0xff]  ;;  %v163_v16 = vld [vmem:[#allocation2 + $0x3d0] sm:$0xff]  ;;  %v166_v17 = vld [vmem:[#allocation2 + $0x3e8] sm:$0xff]  ;;  %v727_v20 = vpack.c.bf16 %v80_v12, %v78_v11 }
  0x33   :  { %788 = vmatprep.subr.bf16.mxu0 %v787_v5  ;;  %v162_v5 = vld [vmem:[#allocation2 + $0x3c8] sm:$0xff]  ;;  %v723_v8 = vpack.c.bf16 %v76_v0, %v74_v63  ;;  %v168_v19 = vld [vmem:[#allocation2 + $0x3f8] sm:$0xff]  ;;  %v77_v21 = vld [vmem:[#allocation2 + $0x120] sm:$0xff] }
  0x34   :  { %v811_v14 = vpack.c.bf16 %v164_v7, %v162_v5  ;;  %v79_v22 = vld [vmem:[#allocation2 + $0x130] sm:$0xff]  ;;  %v82_v23 = vld [vmem:[#allocation2 + $0x148] sm:$0xff]  ;;  %v84_v24 = vld [vmem:[#allocation2 + $0x158] sm:$0xff]  ;;  %v815_v26 = vpack.c.bf16 %v168_v19, %v166_v17 }
  0x35   :  { %714 = vmatpush1.bf16.msra.mxu1 %v713_v46  ;;  %v165_v27 = vld [vmem:[#allocation2 + $0x3e0] sm:$0xff]  ;;  %v167_v28 = vld [vmem:[#allocation2 + $0x3f0] sm:$0xff]  ;;  %v172_v31 = vld [vmem:[#allocation2 + $0x418] sm:$0xff]  ;;  %v731_v32 = vpack.c.bf16 %v84_v24, %v82_v23 }
  0x36   :  { %790 = vmatpush1.bf16.msra.mxu0 %v789_v15  ;;  %716 = vmatprep.subr.bf16.mxu1 %v715_v48  ;;  %v161_v15 = vld [vmem:[#allocation2 + $0x3c0] sm:$0xff]  ;;  %v83_v34 = vld [vmem:[#allocation2 + $0x150] sm:$0xff]  ;;  %v86_v35 = vld [vmem:[#allocation2 + $0x168] sm:$0xff]  ;;  %v817_v37 = vpack.c.bf16 %v167_v28, %v165_v27 }
  0x37   :  { %792 = vmatprep.subr.bf16.mxu0 %v791_v18  ;;  %v725_v18 = vpack.c.bf16 %v75_v10, %v73_v9  ;;  %v813_v25 = vpack.c.bf16 %v163_v16, %v161_v15  ;;  %v81_v33 = vld [vmem:[#allocation2 + $0x140] sm:$0xff]  ;;  %v88_v36 = vld [vmem:[#allocation2 + $0x178] sm:$0xff]  ;;  %v171_v40 = vld [vmem:[#allocation2 + $0x410] sm:$0xff] }
  0x38   :  { %v169_v39 = vld [vmem:[#allocation2 + $0x400] sm:$0xff]  ;;  %v176_v43 = vld [vmem:[#allocation2 + $0x438] sm:$0xff]  ;;  %v735_v44 = vpack.c.bf16 %v88_v36, %v86_v35  ;;  %v87_v46 = vld [vmem:[#allocation2 + $0x170] sm:$0xff] }
  0x39   :  { %718 = vmatpush1.bf16.msra.mxu1 %v717_v58  ;;  %v85_v45 = vld [vmem:[#allocation2 + $0x160] sm:$0xff]  ;;  %v90_v47 = vld [vmem:[#allocation2 + $0x188] sm:$0xff]  ;;  %v92_v48 = vld [vmem:[#allocation2 + $0x198] sm:$0xff]  ;;  %v821_v51 = vpack.c.bf16 %v171_v40, %v169_v39 }
  0x3a   :  { %794 = vmatpush1.bf16.msra.mxu0 %v793_v29  ;;  %720 = vmatprep.subr.bf16.mxu1 %v719_v60  ;;  %v170_v29 = vld [vmem:[#allocation2 + $0x408] sm:$0xff]  ;;  %v36_v50 = vld [vmem:[%s1127_s0 + $0x10] sm:$0xff]  ;;  %v173_v52 = vld [vmem:[#allocation2 + $0x420] sm:$0xff]  ;;  %v737_v57 = vpack.c.bf16 %v87_v46, %v85_v45  ;;  %v739_v58 = vpack.c.bf16 %v92_v48, %v90_v47 }
  0x3b   :  { %796 = vmatprep.subr.bf16.mxu0 %v795_v30  ;;  %v729_v30 = vpack.c.bf16 %v79_v22, %v77_v21  ;;  %v819_v38 = vpack.c.bf16 %v172_v31, %v170_v29  ;;  %v35_v49 = vld [vmem:[%s1127_s0 + $0x8] sm:$0xff]  ;;  %v180_v56 = vld [vmem:[#allocation2 + $0x458] sm:$0xff]  ;;  %v89_v59 = vld [vmem:[#allocation2 + $0x180] sm:$0xff] }
  0x3c   :  { %317 = vmatprep.mubr.f32.mxu1 %v35_v49  ;;  %v178_v55 = vld [vmem:[#allocation2 + $0x448] sm:$0xff]  ;;  %v91_v60 = vld [vmem:[#allocation2 + $0x190] sm:$0xff]  ;;  %v96_v63 = vld [vmem:[#allocation2 + $0x1b8] sm:$0xff] }
  0x3d   :  { %722 = vmatpush1.bf16.msra.mxu1 %v721_v6  ;;  %v39_v61 = vld [vmem:[%s1127_s0 + $0x28] sm:$0xff]  ;;  %v179_v3 = vld [vmem:[#allocation2 + $0x450] sm:$0xff]  ;;  %v741_v5 = vpack.c.bf16 %v91_v60, %v89_v59  ;;  %v184_v6 = vld [vmem:[#allocation2 + $0x478] sm:$0xff] }
  0x3e   :  { %798 = vmatpush1.bf16.msra.mxu0 %v797_v41  ;;  %724 = vmatprep.subr.bf16.mxu1 %v723_v8  ;;  %v174_v41 = vld [vmem:[#allocation2 + $0x428] sm:$0xff]  ;;  %v93_v8 = vld [vmem:[#allocation2 + $0x1a0] sm:$0xff]  ;;  %v95_v9 = vld [vmem:[#allocation2 + $0x1b0] sm:$0xff] }
  0x3f   :  { %800 = vmatprep.subr.bf16.mxu0 %v799_v42  ;;  %v733_v42 = vpack.c.bf16 %v83_v34, %v81_v33  ;;  %v94_v62 = vld [vmem:[#allocation2 + $0x1a8] sm:$0xff]  ;;  %v100_v11 = vld [vmem:[#allocation2 + $0x1d8] sm:$0xff]  ;;  %v183_v15 = vld [vmem:[#allocation2 + $0x470] sm:$0xff]  ;;  %v745_v17 = vpack.c.bf16 %v95_v9, %v93_v8 }
  0x40   :  { %v182_v4 = vld [vmem:[#allocation2 + $0x468] sm:$0xff]  ;;  %v743_v7 = vpack.c.bf16 %v96_v63, %v94_v62  ;;  %v99_v21 = vld [vmem:[#allocation2 + $0x1d0] sm:$0xff]  ;;  %v104_v23 = vld [vmem:[#allocation2 + $0x1f8] sm:$0xff] }
  0x41   :  { %726 = vmatpush1.bf16.msra.mxu1 %v725_v18  ;;  %v98_v10 = vld [vmem:[#allocation2 + $0x1c8] sm:$0xff]  ;;  %v188_v18 = vld [vmem:[#allocation2 + $0x498] sm:$0xff]  ;;  %v187_v27 = vld [vmem:[#allocation2 + $0x490] sm:$0xff] }
  0x42   :  { %802 = vmatpush1.bf16.msra.mxu0 %v801_v53  ;;  %728 = vmatprep.subr.bf16.mxu1 %v727_v20  ;;  %v823_v53 = vpack.c.bf16 %v176_v43, %v174_v41  ;;  %v186_v16 = vld [vmem:[#allocation2 + $0x488] sm:$0xff]  ;;  %v747_v19 = vpack.c.bf16 %v100_v11, %v98_v10  ;;  %v97_v20 = vld [vmem:[#allocation2 + $0x1c0] sm:$0xff]  ;;  %v103_v33 = vld [vmem:[#allocation2 + $0x1f0] sm:$0xff] }
  0x43   :  { %804 = vmatprep.subr.bf16.mxu0 %v803_v54  ;;  %v175_v54 = vld [vmem:[#allocation2 + $0x430] sm:$0xff]  ;;  %v102_v22 = vld [vmem:[#allocation2 + $0x1e8] sm:$0xff]  ;;  %v749_v29 = vpack.c.bf16 %v99_v21, %v97_v20  ;;  %v236_v35 = vld [vmem:[#allocation2 + $0x618] sm:$0xff] }
  0x44   :  { %v825_v0 = vpack.c.bf16 %v175_v54, %v173_v52  ;;  %v190_v28 = vld [vmem:[#allocation2 + $0x4a8] sm:$0xff]  ;;  %v751_v31 = vpack.c.bf16 %v104_v23, %v102_v22  ;;  %v191_v39 = vld [vmem:[#allocation2 + $0x4b0] sm:$0xff]  ;;  %v555_v46 = vld [vmem:[%s1130_s3 + $0x80] sm:$0xff] }
  0x45   :  { %730 = vmatpush1.bf16.msra.mxu1 %v729_v30  ;;  %v192_v30 = vld [vmem:[#allocation2 + $0x4b8] sm:$0xff]  ;;  %v234_v34 = vld [vmem:[#allocation2 + $0x608] sm:$0xff]  ;;  %v235_v45 = vld [vmem:[#allocation2 + $0x610] sm:$0xff] }
  0x46   :  { %806 = vmatpush1.bf16.msra.mxu0 %v805_v1  ;;  %732 = vmatprep.subr.bf16.mxu1 %v731_v32  ;;  %v827_v1 = vpack.c.bf16 %v180_v56, %v178_v55  ;;  %v101_v32 = vld [vmem:[#allocation2 + $0x1e0] sm:$0xff]  ;;  %v194_v40 = vld [vmem:[#allocation2 + $0x4c8] sm:$0xff]  ;;  %v883_v43 = vpack.c.bf16 %v236_v35, %v234_v34  ;;  %v200_v55 = vld [vmem:[#allocation2 + $0x4f8] sm:$0xff] }
  0x47   :  { %808 = vmatprep.subr.bf16.mxu0 %v807_v2  ;;  %v177_v2 = vld [vmem:[#allocation2 + $0x440] sm:$0xff]  ;;  %v753_v41 = vpack.c.bf16 %v103_v33, %v101_v32  ;;  %v556_v47 = vld [vmem:[%s1130_s3 + $0x88] sm:$0xff]  ;;  %v557_v59 = vld [vmem:[%s1130_s3 + $0x90] sm:$0xff] }
  0x48   :  { %v829_v12 = vpack.c.bf16 %v179_v3, %v177_v2  ;;  %v193_v49 = vld [vmem:[#allocation2 + $0x4c0] sm:$0xff]  ;;  %v198_v52 = vld [vmem:[#allocation2 + $0x4e8] sm:$0xff]  ;;  %v887_v56 = vpack.c.bf16 %v556_v47, %v555_v46  ;;  %v558_v60 = vld [vmem:[%s1130_s3 + $0x98] sm:$0xff] }
  0x49   :  { %734 = vmatpush1.bf16.msra.mxu1 %v733_v42  ;;  %v196_v42 = vld [vmem:[#allocation2 + $0x4d8] sm:$0xff]  ;;  %v197_v62 = vld [vmem:[#allocation2 + $0x4e0] sm:$0xff]  ;;  %v847_v63 = vpack.c.bf16 %v200_v55, %v198_v52  ;;  %v40_v2 = vld [vmem:[%s1127_s0 + $0x30] sm:$0xff] }
  0x4a   :  { %810 = vmatpush1.bf16.msra.mxu0 %v809_v13  ;;  %736 = vmatprep.subr.bf16.mxu1 %v735_v44  ;;  %v831_v13 = vpack.c.bf16 %v184_v6, %v182_v4  ;;  %v233_v44 = vld [vmem:[#allocation2 + $0x600] sm:$0xff]  ;;  %v204_v4 = vld [vmem:[#allocation2 + $0x518] sm:$0xff]  ;;  %v891_v6 = vpack.c.bf16 %v558_v60, %v557_v59  ;;  %v560_v10 = vld [vmem:[%s1130_s3 + $0xa8] sm:$0xff] }
  0x4b   :  { %812 = vmatprep.subr.bf16.mxu0 %v811_v14  ;;  %v181_v14 = vld [vmem:[#allocation2 + $0x460] sm:$0xff]  ;;  %v885_v54 = vpack.c.bf16 %v235_v45, %v233_v44  ;;  %v542_v8 = vld [vmem:[%s1130_s3 + $0x18] sm:$0xff]  ;;  %v544_v20 = vld [vmem:[%s1130_s3 + $0x28] sm:$0xff] }
  0x4c   :  { %v833_v24 = vpack.c.bf16 %v183_v15, %v181_v14  ;;  %v559_v9 = vld [vmem:[%s1130_s3 + $0xa0] sm:$0xff]  ;;  %v203_v14 = vld [vmem:[#allocation2 + $0x510] sm:$0xff]  ;;  %v206_v15 = vld [vmem:[#allocation2 + $0x528] sm:$0xff] }
  0x4d   :  { %738 = vmatpush1.bf16.msra.mxu1 %v737_v57  ;;  %v539_v57 = vld [vmem:[%s1130_s3] sm:$0xff]  ;;  %v561_v21 = vld [vmem:[%s1130_s3 + $0xb0] sm:$0xff]  ;;  %v562_v22 = vld [vmem:[%s1130_s3 + $0xb8] sm:$0xff] }
  0x4e   :  { %814 = vmatpush1.bf16.msra.mxu0 %v813_v25  ;;  %740 = vmatprep.subr.bf16.mxu1 %v739_v58  ;;  %v835_v25 = vpack.c.bf16 %v188_v18, %v186_v16  ;;  %v540_v58 = vld [vmem:[%s1130_s3 + $0x8] sm:$0xff]  ;;  %v895_v18 = vpack.c.bf16 %v560_v10, %v559_v9  ;;  %v546_v32 = vld [vmem:[%s1130_s3 + $0x38] sm:$0xff]  ;;  %v563_v33 = vld [vmem:[%s1130_s3 + $0xc0] sm:$0xff] }
  0x4f   :  { %816 = vmatprep.subr.bf16.mxu0 %v815_v26  ;;  %v185_v26 = vld [vmem:[#allocation2 + $0x480] sm:$0xff]  ;;  %v889_v3 = vpack.c.bf16 %v540_v58, %v539_v57  ;;  %v564_v34 = vld [vmem:[%s1130_s3 + $0xc8] sm:$0xff]  ;;  %v219_v55 = vld [vmem:[#allocation2 + $0x590] sm:$0xff] }
  0x50   :  { %v837_v36 = vpack.c.bf16 %v187_v27, %v185_v26  ;;  %v207_v26 = vld [vmem:[#allocation2 + $0x530] sm:$0xff]  ;;  %v210_v27 = vld [vmem:[#allocation2 + $0x548] sm:$0xff]  ;;  %v213_v47 = vld [vmem:[#allocation2 + $0x560] sm:$0xff] }
  0x51   :  { %742 = vmatpush1.bf16.msra.mxu1 %v741_v5  ;;  %v958_v5 = vmov 0.0   ;;  %v548_v44 = vld [vmem:[%s1130_s3 + $0x48] sm:$0xff]  ;;  %v224_v57 = vld [vmem:[#allocation2 + $0x5b8] sm:$0xff]  ;;  %v221_v60 = vld [vmem:[#allocation2 + $0x5a0] sm:$0xff] }
  0x52   :  { %818 = vmatpush1.bf16.msra.mxu0 %v817_v37  ;;  %744 = vmatprep.subr.bf16.mxu1 %v743_v7  ;;  %v839_v37 = vpack.c.bf16 %v192_v30, %v190_v28  ;;  %v541_v7 = vld [vmem:[%s1130_s3 + $0x10] sm:$0xff]  ;;  %v899_v30 = vpack.c.bf16 %v562_v22, %v561_v21  ;;  %v551_v21 = vld [vmem:[%s1130_s3 + $0x60] sm:$0xff]  ;;  %v552_v22 = vld [vmem:[%s1130_s3 + $0x68] sm:$0xff] }
  0x53   :  { %820 = vmatprep.subr.bf16.mxu0 %v819_v38  ;;  %v189_v38 = vld [vmem:[#allocation2 + $0x4a0] sm:$0xff]  ;;  %v893_v16 = vpack.c.bf16 %v542_v8, %v541_v7  ;;  %v231_v9 = vld [vmem:[#allocation2 + $0x5f0] sm:$0xff] }
  0x54   :  { %v841_v48 = vpack.c.bf16 %v191_v39, %v189_v38  ;;  %v211_v38 = vld [vmem:[#allocation2 + $0x550] sm:$0xff]  ;;  %v214_v39 = vld [vmem:[#allocation2 + $0x568] sm:$0xff]  ;;  %v229_v8 = vld [vmem:[#allocation2 + $0x5e0] sm:$0xff] }
  0x55   :  { %389 = vmatmul.mubr.f32.vlgmr.msra.gmra.mrb[0].mxu0 %v36_v50  ;;  %746 = vmatpush1.bf16.msra.mxu1 %v745_v17  ;;  %v843_v50 = vpack.c.bf16 %v196_v42, %v194_v40  ;;  %v208_v17 = vld [vmem:[#allocation2 + $0x538] sm:$0xff]  ;;  %v903_v42 = vpack.c.bf16 %v564_v34, %v563_v33  ;;  %v881_v10 = vpack.c.bf16 %v231_v9, %v229_v8  ;;  %v239_v34 = vlaneseq }
  0x56   :  { %822 = vmatpush1.bf16.msra.mxu0 %v821_v51  ;;  %459 = vmatprep.mubr.f32.mxu0 %v39_v61  ;;  %v195_v51 = vld [vmem:[#allocation2 + $0x4d0] sm:$0xff] }
  0x57   :  { %824 = vmatprep.subr.bf16.mxu0 %v823_v53  ;;  %748 = vmatprep.subr.bf16.mxu1 %v747_v19  ;;  %v34_v53 = vld [vmem:[%s1127_s0] sm:$0xff]  ;;  %v845_v61 = vpack.c.bf16 %v195_v51, %v193_v49  ;;  %v220_v51 = vld [vmem:[#allocation2 + $0x598] sm:$0xff] }
  0x58   :  { %v543_v19 = vld [vmem:[%s1130_s3 + $0x20] sm:$0xff] }
  0x59   :  { %750 = vmatpush1.bf16.msra.mxu1 %v749_v29  ;;  %v897_v28 = vpack.c.bf16 %v544_v20, %v543_v19  ;;  %v212_v29 = vld [vmem:[#allocation2 + $0x558] sm:$0xff]  ;;  %v568_v19 = vld [vmem:[%s1130_s3 + $0xe8] sm:$0xff] }
  0x5a   :  { %826 = vmatpush1.bf16.msra.mxu0 %v825_v0  ;;  %752 = vmatprep.subr.bf16.mxu1 %v751_v31  ;;  %v199_v0 = vld [vmem:[#allocation2 + $0x4f0] sm:$0xff] }
  0x5b   :  { %828 = vmatprep.subr.bf16.mxu0 %v827_v1  ;;  %v202_v1 = vld [vmem:[#allocation2 + $0x508] sm:$0xff]  ;;  %v849_v11 = vpack.c.bf16 %v199_v0, %v197_v62  ;;  %v545_v31 = vld [vmem:[%s1130_s3 + $0x30] sm:$0xff] }
  0x5c   :  { %v901_v40 = vpack.c.bf16 %v546_v32, %v545_v31  ;;  %v226_v62 = vld [vmem:[#allocation2 + $0x5c8] sm:$0xff] }
  0x5d   :  { %754 = vmatpush1.bf16.msra.mxu1 %v753_v41  ;;  %v216_v41 = vld [vmem:[#allocation2 + $0x578] sm:$0xff] }
  0x5e   :  { %830 = vmatpush1.bf16.msra.mxu0 %v829_v12  ;;  %884 = vmatprep.subr.bf16.mxu1 %v883_v43  ;;  %v851_v12 = vpack.c.bf16 %v204_v4, %v202_v1  ;;  %v547_v43 = vld [vmem:[%s1130_s3 + $0x40] sm:$0xff]  ;;  %v863_v46 = vpack.c.bf16 %v216_v41, %v214_v39  ;;  %v230_v4 = vld [vmem:[#allocation2 + $0x5e8] sm:$0xff] }
  0x5f   :  { %832 = vmatprep.subr.bf16.mxu0 %v831_v13  ;;  %v201_v13 = vld [vmem:[#allocation2 + $0x500] sm:$0xff]  ;;  %v905_v49 = vpack.c.bf16 %v548_v44, %v547_v43 }
  0x60   :  { %318 = vmatmul.mubr.f32.vlgmr.msra.gmra.mrb[0].mxu1 %v34_v53  ;;  %v853_v23 = vpack.c.bf16 %v203_v14, %v201_v13  ;;  %v566_v13 = vld [vmem:[%s1130_s3 + $0xd8] sm:$0xff] }
  0x61   :  { %886 = vmatpush1.bf16.msra.mxu1 %v885_v54  ;;  %530 = vmatprep.mubr.f32.mxu1 %v958_v5  ;;  %v217_v54 = vld [vmem:[#allocation2 + $0x580] sm:$0xff]  ;;  %v232_v5 = vld [vmem:[#allocation2 + $0x5f8] sm:$0xff] }
  0x62   :  { %834 = vmatpush1.bf16.msra.mxu0 %v833_v24  ;;  %888 = vmatprep.subr.bf16.mxu1 %v887_v56  ;;  %v855_v24 = vpack.c.bf16 %v208_v17, %v206_v15  ;;  %v222_v56 = vld [vmem:[#allocation2 + $0x5a8] sm:$0xff]  ;;  %v869_v58 = vpack.c.bf16 %v219_v55, %v217_v54  ;;  %v879_v7 = vpack.c.bf16 %v232_v5, %v230_v4  ;;  %v549_v15 = vld [vmem:[%s1130_s3 + $0x50] sm:$0xff] }
  0x63   :  { %836 = vmatprep.subr.bf16.mxu0 %v835_v25  ;;  %v205_v25 = vld [vmem:[#allocation2 + $0x520] sm:$0xff]  ;;  %v871_v59 = vpack.c.bf16 %v224_v57, %v222_v56 }
  0x64   :  { %654 = vmatmul.mubr.msk.f32.vlgmr.msra.gmra.mrb[2].mxu1 %vm249_vm0, %v40_v2  ;;  %v857_v35 = vpack.c.bf16 %v207_v26, %v205_v25  ;;  %v225_v2 = vld [vmem:[#allocation2 + $0x5c0] sm:$0xff]  ;;  %v570_v25 = vld [vmem:[%s1130_s3 + $0xf8] sm:$0xff] }
  0x65   :  { %890 = vmatpush3.bf16.msra.mxu1 %v889_v3  ;;  %v227_v3 = vld [vmem:[#allocation2 + $0x5d0] sm:$0xff] }
  0x66   :  { %838 = vmatpush1.bf16.msra.mxu0 %v837_v36  ;;  %892 = vmatprep.subr.bf16.mxu1 %v891_v6  ;;  %v859_v36 = vpack.c.bf16 %v212_v29, %v210_v27  ;;  %v877_v6 = vpack.c.bf16 %v227_v3, %v225_v2  ;;  %v553_v27 = vld [vmem:[%s1130_s3 + $0x70] sm:$0xff] }
  0x67   :  { %840 = vmatprep.subr.bf16.mxu0 %v839_v37  ;;  %v209_v37 = vld [vmem:[#allocation2 + $0x540] sm:$0xff] }
  0x68   :  { %v861_v45 = vpack.c.bf16 %v211_v38, %v209_v37  ;;  %v237_v37 = vld [vmem:[%s1129_s2] sm:$0x3] }
  0x69   :  { %894 = vmatpush3.bf16.msra.mxu1 %v893_v16  ;;  %v550_v16 = vld [vmem:[%s1130_s3 + $0x58] sm:$0xff] }
  0x6a   :  { %842 = vmatpush1.bf16.msra.mxu0 %v841_v48  ;;  %896 = vmatprep.subr.bf16.mxu1 %v895_v18  ;;  %v215_v48 = vld [vmem:[#allocation2 + $0x570] sm:$0xff]  ;;  %v909_v17 = vpack.c.bf16 %v550_v16, %v549_v15  ;;  %v567_v18 = vld [vmem:[%s1130_s3 + $0xe0] sm:$0xff] }
  0x6b   :  { %844 = vmatprep.subr.bf16.mxu0 %v843_v50  ;;  %v218_v50 = vld [vmem:[#allocation2 + $0x588] sm:$0xff]  ;;  %v865_v52 = vpack.c.bf16 %v215_v48, %v213_v47  ;;  %v911_v20 = vpack.c.bf16 %v568_v19, %v567_v18 }
  0x6c   :  { %v867_v53 = vpack.c.bf16 %v220_v51, %v218_v50 }
  0x6d   :  { %898 = vmatpush3.bf16.msra.mxu1 %v897_v28  ;;  %v554_v28 = vld [vmem:[%s1130_s3 + $0x78] sm:$0xff] }
  0x6e   :  { %846 = vmatpush1.bf16.msra.mxu0 %v845_v61  ;;  %900 = vmatprep.subr.bf16.mxu1 %v899_v30  ;;  %v223_v61 = vld [vmem:[#allocation2 + $0x5b0] sm:$0xff]  ;;  %v917_v29 = vpack.c.bf16 %v554_v28, %v553_v27 }
  0x6f   :  { %848 = vmatprep.subr.bf16.mxu0 %v847_v63  ;;  %v228_v63 = vld [vmem:[#allocation2 + $0x5d8] sm:$0xff]  ;;  %v873_v0 = vpack.c.bf16 %v223_v61, %v221_v60 }
  0x70   :  { %v875_v1 = vpack.c.bf16 %v228_v63, %v226_v62 }
  0x71   :  { %902 = vmatpush3.bf16.msra.mxu1 %v901_v40 }
  0x72   :  { %850 = vmatpush1.bf16.msra.mxu0 %v849_v11  ;;  %904 = vmatprep.subr.bf16.mxu1 %v903_v42  ;;  %v38_v11 = vld [vmem:[%s1127_s0 + $0x20] sm:$0xff] }
  0x73   :  { %852 = vmatprep.subr.bf16.mxu0 %v851_v12  ;;  %v565_v12 = vld [vmem:[%s1130_s3 + $0xd0] sm:$0xff] }
  0x74   :  { %v907_v14 = vpack.c.bf16 %v566_v13, %v565_v12 }
  0x75   :  { %906 = vmatpush3.bf16.msra.mxu1 %v905_v49 }
  0x76   :  { %854 = vmatpush1.bf16.msra.mxu0 %v853_v23  ;;  %908 = vmatprep.subr.bf16.mxu1 %v907_v14  ;;  %v913_v23 = vpack.c.bf16 %v552_v22, %v551_v21 }
  0x77   :  { %856 = vmatprep.subr.bf16.mxu0 %v855_v24  ;;  %v569_v24 = vld [vmem:[%s1130_s3 + $0xf0] sm:$0xff] }
  0x78   :  { %v915_v26 = vpack.c.bf16 %v570_v25, %v569_v24 }
  0x79   :  { %910 = vmatpush3.bf16.msra.mxu1 %v909_v17 }
  0x7a   :  { %858 = vmatpush1.bf16.msra.mxu0 %v857_v35  ;;  %912 = vmatprep.subr.bf16.mxu1 %v911_v20  ;;  %v240_v35 = vshrl.u32 %v239_v34, 7 }
  0x7b   :  { %860 = vmatprep.subr.bf16.mxu0 %v859_v36 }
  0x7c   :  { %v241_v36 = vsub.s32 0, %v240_v35  ;;  %v245_v38 = vsub.s32 1, %v240_v35 }
  0x7d   :  { %914 = vmatpush3.bf16.msra.mxu1 %v913_v23 }
  0x7e   :  { %862 = vmatpush1.bf16.msra.mxu0 %v861_v45  ;;  %916 = vmatprep.subr.bf16.mxu1 %v915_v26  ;;  %v242_v39 = vrot.slane %v237_v37, %v241_v36  ;;  %v246_v40 = vrot.slane %v237_v37, %v245_v38 }
  0x7f   :  { %864 = vmatprep.subr.bf16.mxu0 %v863_v46 }
  0x81   :  { %918 = vmatpush3.bf16.msra.mxu1 %v917_v29 }
  0x82   :  { %866 = vmatpush1.bf16.msra.mxu0 %v865_v52  ;;  %v655_v52 = vld [vmem:[%s1131_s4] ss:$0 sm:$0xff] }
  0x83   :  { %868 = vmatprep.subr.bf16.mxu0 %v867_v53 }
  0x86   :  { %870 = vmatpush1.bf16.msra.mxu0 %v869_v58 }
  0x87   :  { %872 = vmatprep.subr.bf16.mxu0 %v871_v59 }
  0x8a   :  { %874 = vmatpush1.bf16.msra.mxu0 %v873_v0 }
  0x8b   :  { %876 = vmatprep.subr.bf16.mxu0 %v875_v1 }
  0x8e   :  { %878 = vmatpush1.bf16.msra.mxu0 %v877_v6 }
  0x8f   :  { %880 = vmatprep.subr.bf16.mxu0 %v879_v7 }
  0x92   :  { %882 = vmatpush1.bf16.msra.mxu0 %v881_v10 }
  0x95   :  { %460 = vmatmul.mubr.f32.vlgmr.msra.gmra.mrb[0].mxu0 %v38_v11 }
 0x133   :  { %v319_v30 = vpop.f32.mrb[0].mxu1 }
 0x134   :  { %v321_v31 = vpop.f32.mrb[1].mxu1  ;;  %v320_v41 = vadd.f32 %v319_v30, %v242_v39 }
 0x135   :  { %v322_v42 = vadd.f32 %v321_v31, %v246_v40 }
 0x137   :  { %v532_v32 = vpop.f32.mrb[2].mxu1 }
 0x138   :  { %v534_v33 = vpop.f32.mrb[3].mxu1 }
 0x168   :  { %v461_v43 = vpop.f32.mrb[0].mxu0 }
 0x169   :  { %v920_v44 = vadd.f32 %v461_v43, %v320_v41  ;;  %v463_v45 = vpop.f32.mrb[1].mxu0 }
 0x16a   :  { %v923_v46 = vadd.f32 %v463_v45, %v322_v42 }
 0x16b   :  { %v921_v47 = vadd.f32 %v920_v44, %v532_v32 }
 0x16c   :  { %v924_v48 = vadd.f32 %v923_v46, %v534_v33 }
 0x16d   :  { %v537_v50 = vmax.f32 %v921_v47, 0.0 }
 0x16e   :  { %v538_v49 = vmax.f32 %v924_v48, 0.0 }
 0x170   :  { %642 = vmatprep.mubr.f32.mxu1 %v538_v49 }
 0x171   :  { %643 = vmatmul.mubr.f32.vlgmr.msra.gmra.mrb[4].mxu1 %v537_v50 }
 0x244   :  { %v688_v51 = vpop.f32.mrb[4].mxu1 }
 0x245   :  { %v689_v53 = vpop.f32.mrb[5].mxu1 }
 0x246   :  { %v690_v54 = vadd.f32 %v689_v53, %v688_v51 }
 0x248   :  { %v645_v55 = vadd.f32 %v690_v54, %v655_v52 }
 0x24a   :  { %648 = vst [vmem:[%s1132_s5] sm:$0xff] %v645_v55 }
 0x24b   :  { %653 = vsyncpa [#allocation3], 1 }

</bundles_post_ra>
